<compile_context>
chip_gen: v6e
topology: v6e:2x2x1
jax: 0.10.0
libtpu: 0.0.40
codegen_flags: <defaults>
</compile_context>

<pallas_src>
import math
import jax
import jax.numpy as jnp
from jax.experimental import pallas as pl
from jax.experimental.pallas import tpu as pltpu

# ------------------------- model hyper-parameters -------------------------
H = 4                 # number of heads
D_MODEL = 32          # model width
D_K = D_MODEL // H    # per-head width
B = 2                 # batch
S = 8                 # sequence length
BS = B * S            # flattened tokens
HBS = H * B * S       # head-folded rows


# ------------------------------ fused Pallas kernel ------------------------
def mha_fused_kernel(xblk_ref, bias_ref, wpk_ref, bfold_ref, wo_ref, bo_ref, o_ref):
    """Fully fused multi-headed attention forward.

    xblk_ref : (3, H*B*S, H*D)   kron(I_H, x) for q / k / v          (64, 128 each)
    bias_ref : (H*B*S, H*B*S)    additive bias: block-diag + mask    (64, 64)
    wpk_ref  : (3, H*D, D_K)     head-folded W^T per projection      (128, 8 each)
    bfold_ref: (3, H*B*S, D_K)   head-folded biases                  (64, 8 each)
    wo_ref   : (D, D)            Wo^T
    bo_ref   : (1, D)
    o_ref    : (B*S, D)
    """
    f32 = jnp.float32

    # Head-folded projections: rows ordered (head, batch, seq).  1/sqrt(d_k) is
    # already folded into wpk[0] / bfold[0].  One MXU matmul each, no slicing.
    q = jnp.dot(xblk_ref[0], wpk_ref[0], preferred_element_type=f32) + bfold_ref[0]
    k = jnp.dot(xblk_ref[1], wpk_ref[1], preferred_element_type=f32) + bfold_ref[1]
    v = jnp.dot(xblk_ref[2], wpk_ref[2], preferred_element_type=f32) + bfold_ref[2]

    # One (64,8)x(8,64) score matmul; the bias carries the (head,batch)
    # block-diagonal structure (-1e9 off-block) plus the user mask.
    s = jax.lax.dot_general(q, k, (((1,), (1,)), ((), ())),
                            preferred_element_type=f32) + bias_ref[...]

    # One numerically-stable softmax over all columns; off-block entries are
    # ~-1e9 below the row max so their probabilities underflow to exactly 0.
    s = s - jnp.max(s, axis=-1, keepdims=True)
    e = jnp.exp(s)
    p = e / jnp.sum(e, axis=-1, keepdims=True)          # exact f32 normalization

    # One (64,64)x(64,8) context matmul.
    ctx = jnp.dot(p, v, preferred_element_type=f32)

    # Merge heads back to (B*S, D): sublane-aligned row slices + one lane concat,
    # then a single output-projection matmul.
    bs = o_ref.shape[0]
    slab = jnp.concatenate([ctx[h * bs:(h + 1) * bs, :] for h in range(H)], axis=1)
    o_ref[...] = jnp.dot(slab, wo_ref[...], preferred_element_type=f32) + bo_ref[...]


# ------------------------- parameter packing (init time) --------------------
def pack_params(params):
    """One-time packing of the 4 nn.Linear layers into kernel-friendly layouts."""
    (wq, bq), (wk, bk), (wv, bv), (wo, bo) = params
    scale = jnp.float32(1.0 / math.sqrt(D_K))

    def fold_w(w):
        # nn.Linear weight w: (out, in), y = x @ w.T.  Head-fold the output
        # features into the contraction dim: w_pk[h*D + c, d] = w.T[c, h*D_K + d].
        return (w.T.reshape(D_MODEL, H, D_K)
                   .transpose(1, 0, 2)
                   .reshape(H * D_MODEL, D_K))

    def fold_b(b):
        # b_fold[h*(B*S) + r, d] = b[h*D_K + d]   (rows ordered (head, batch, seq))
        return jnp.repeat(b.reshape(H, D_K), BS, axis=0)

    w_pk = jnp.stack([fold_w(wq) * scale, fold_w(wk), fold_w(wv)])      # (3, H*D, D_K)
    b_fold = jnp.stack([fold_b(bq) * scale, fold_b(bk), fold_b(bv)])    # (3, H*B*S, D_K)
    return dict(w_pk=w_pk, b_fold=b_fold,
                wo_t=wo.T, bo=bo.reshape(1, D_MODEL))


# ------------------------------ jitted wrapper ------------------------------
def _build_xblk(x2d):
    # kron(I_H, x): block-diagonal replication so that a single (H*B*S, H*D) x
    # (H*D, D_K) matmul yields head-folded projections with zero in-kernel relayout.
    eye_h = jnp.eye(H, dtype=x2d.dtype)
    blk = eye_h[:, None, :, None] * x2d[None, :, None, :]       # (H, BS, H, D)
    return blk.reshape(H * x2d.shape[0], H * x2d.shape[1])      # (64, 128)


@jax.jit
def _mha_forward(packed, query, key, value, mask):
    nb, s, d = query.shape
    bs = nb * s

    xblk = jnp.stack([_build_xblk(query.reshape(bs, d).astype(jnp.float32)),
                      _build_xblk(key.reshape(bs, d).astype(jnp.float32)),
                      _build_xblk(value.reshape(bs, d).astype(jnp.float32))])  # (3,64,128)

    # Additive attention bias: user mask inside each (head,batch) diagonal block,
    # -1e9 everywhere off-block (rows/cols ordered (head, batch, seq)).
    neg = jnp.float32(-1.0e9)
    mask_bias = jnp.where(mask == 0, neg, jnp.float32(0.0)).astype(jnp.float32)  # (B,S,S)
    hb = H * nb
    eye_hb = jnp.arange(hb)[:, None] == jnp.arange(hb)[None, :]                  # (HB,HB)
    mask_rep = jnp.tile(mask_bias, (H, 1, 1))                                    # (HB,S,S)
    bias = jnp.where(eye_hb[:, None, :, None], mask_rep[:, :, None, :], neg)     # (HB,S,HB,S)
    bias = bias.reshape(hb * s, hb * s)                                          # (64,64)

    out2d = pl.pallas_call(
        mha_fused_kernel,
        out_shape=jax.ShapeDtypeStruct((bs, d), jnp.float32),
        in_specs=[pl.BlockSpec(memory_space=pltpu.MemorySpace.VMEM)] * 6,
        out_specs=pl.BlockSpec(memory_space=pltpu.MemorySpace.VMEM),
    )(xblk, bias, packed["w_pk"], packed["b_fold"], packed["wo_t"], packed["bo"])
    return out2d.reshape(nb, s, d)


def multi_headed_attention(packed, query, key, value, mask=None):
    """Mirrors MultiHeadedAttention.forward (eval mode)."""
    if mask is None:
        mask = jnp.ones((query.shape[0], query.shape[1], key.shape[1]), jnp.float32)
    return _mha_forward(packed, query, key, value, mask)


# --------------------------- pure-JAX reference -----------------------------
def reference(params, query, key, value, mask=None):
    (wq, bq), (wk, bk), (wv, bv), (wo, bo) = params
    nb, s, d = query.shape
    hp = jax.lax.Precision.HIGHEST

    def proj(x, w, b):
        y = jnp.dot(x.reshape(nb * s, d), w.T, precision=hp) + b
        return y.reshape(nb, s, H, D_K).transpose(0, 2, 1, 3)

    q, k, v = proj(query, wq, bq), proj(key, wk, bk), proj(value, wv, bv)
    scores = jnp.einsum("bhqd,bhkd->bhqk", q, k, precision=hp) / math.sqrt(D_K)
    if mask is not None:
        scores = jnp.where(mask[:, None, :, :] == 0, -1.0e9, scores)
    p = jax.nn.softmax(scores, axis=-1)
    x = jnp.einsum("bhqk,bhkd->bhqd", p, v, precision=hp)
    x = x.transpose(0, 2, 1, 3).reshape(nb, s, H * D_K)
    return (jnp.dot(x.reshape(nb * s, d), wo.T, precision=hp) + bo).reshape(nb, s, d)


# ---------------------------------- main ------------------------------------
if __name__ == "__main__":
    key0 = jax.random.PRNGKey(0)
    keys = jax.random.split(key0, 12)

    def init_linear(kw, kb):
        w = jax.random.normal(kw, (D_MODEL, D_MODEL), jnp.float32) * 0.05
        b = jax.random.normal(kb, (D_MODEL,), jnp.float32) * 0.05
        return (w, b)

    params = tuple(init_linear(keys[2 * i], keys[2 * i + 1]) for i in range(4))
    packed = pack_params(params)   # one-time packing; not in the per-call path

    query = jax.random.normal(keys[8], (B, S, D_MODEL), jnp.float32)
    key_in = jax.random.normal(keys[9], (B, S, D_MODEL), jnp.float32)
    value = jax.random.normal(keys[10], (B, S, D_MODEL), jnp.float32)
    # Causal mask (B, S, S); the torch module unsqueezes it to (B, 1, S, S).
    mask = jnp.broadcast_to(jnp.tril(jnp.ones((S, S), jnp.float32)), (B, S, S))

    out = multi_headed_attention(packed, query, key_in, value, mask)
    out = jax.block_until_ready(out)

    ref = reference(params, query, key_in, value, mask)
    assert out.shape == (B, S, D_MODEL)
    assert jnp.allclose(out, ref, atol=1e-4, rtol=1e-4), "mismatch vs reference"

    print("KERNEL_OK")
</pallas_src>

<mosaic_0001>
module attributes {stable_mosaic.version = 11 : i64} {
  func.func @mha_fused_kernel(%arg0: memref<3x64x128xf32, #tpu.memory_space<vmem>>, %arg1: memref<64x64xf32, #tpu.memory_space<vmem>>, %arg2: memref<3x128x8xf32, #tpu.memory_space<vmem>>, %arg3: memref<3x64x8xf32, #tpu.memory_space<vmem>>, %arg4: memref<32x32xf32, #tpu.memory_space<vmem>>, %arg5: memref<1x32xf32, #tpu.memory_space<vmem>>, %arg6: memref<16x32xf32, #tpu.memory_space<vmem>>) attributes {dimension_semantics = [], scalar_prefetch = 0 : i64, scratch_operands = 0 : i64, tpu.core_type = #tpu.core_type<tc>} {
    %c0 = arith.constant 0 : index
    %c0_0 = arith.constant 0 : index
    %c0_1 = arith.constant 0 : index
    %0 = vector.load %arg0[%c0, %c0_0, %c0_1] : memref<3x64x128xf32, #tpu.memory_space<vmem>>, vector<1x64x128xf32>
    %1 = vector.shape_cast %0 : vector<1x64x128xf32> to vector<64x128xf32>
    %c0_2 = arith.constant 0 : index
    %c0_3 = arith.constant 0 : index
    %c0_4 = arith.constant 0 : index
    %2 = vector.load %arg2[%c0_2, %c0_3, %c0_4] : memref<3x128x8xf32, #tpu.memory_space<vmem>>, vector<1x128x8xf32>
    %3 = vector.shape_cast %2 : vector<1x128x8xf32> to vector<128x8xf32>
    %cst = arith.constant dense<0.000000e+00> : vector<64x8xf32>
    %4 = tpu.matmul %1, %3, %cst {dimension_numbers = #tpu.dot_dimension_numbers<[1], [0], [0], [1], [0, 0, 1, 1], [], []>} : vector<64x128xf32>, vector<128x8xf32>, vector<64x8xf32> -> vector<64x8xf32>
    %c0_5 = arith.constant 0 : index
    %c0_6 = arith.constant 0 : index
    %c0_7 = arith.constant 0 : index
    %5 = vector.load %arg3[%c0_5, %c0_6, %c0_7] : memref<3x64x8xf32, #tpu.memory_space<vmem>>, vector<1x64x8xf32>
    %6 = vector.shape_cast %5 : vector<1x64x8xf32> to vector<64x8xf32>
    %7 = arith.addf %4, %6 : vector<64x8xf32>
    %c1 = arith.constant 1 : index
    %c0_8 = arith.constant 0 : index
    %c0_9 = arith.constant 0 : index
    %8 = vector.load %arg0[%c1, %c0_8, %c0_9] : memref<3x64x128xf32, #tpu.memory_space<vmem>>, vector<1x64x128xf32>
    %9 = vector.shape_cast %8 : vector<1x64x128xf32> to vector<64x128xf32>
    %c1_10 = arith.constant 1 : index
    %c0_11 = arith.constant 0 : index
    %c0_12 = arith.constant 0 : index
    %10 = vector.load %arg2[%c1_10, %c0_11, %c0_12] : memref<3x128x8xf32, #tpu.memory_space<vmem>>, vector<1x128x8xf32>
    %11 = vector.shape_cast %10 : vector<1x128x8xf32> to vector<128x8xf32>
    %cst_13 = arith.constant dense<0.000000e+00> : vector<64x8xf32>
    %12 = tpu.matmul %9, %11, %cst_13 {dimension_numbers = #tpu.dot_dimension_numbers<[1], [0], [0], [1], [0, 0, 1, 1], [], []>} : vector<64x128xf32>, vector<128x8xf32>, vector<64x8xf32> -> vector<64x8xf32>
    %c1_14 = arith.constant 1 : index
    %c0_15 = arith.constant 0 : index
    %c0_16 = arith.constant 0 : index
    %13 = vector.load %arg3[%c1_14, %c0_15, %c0_16] : memref<3x64x8xf32, #tpu.memory_space<vmem>>, vector<1x64x8xf32>
    %14 = vector.shape_cast %13 : vector<1x64x8xf32> to vector<64x8xf32>
    %15 = arith.addf %12, %14 : vector<64x8xf32>
    %c2 = arith.constant 2 : index
    %c0_17 = arith.constant 0 : index
    %c0_18 = arith.constant 0 : index
    %16 = vector.load %arg0[%c2, %c0_17, %c0_18] : memref<3x64x128xf32, #tpu.memory_space<vmem>>, vector<1x64x128xf32>
    %17 = vector.shape_cast %16 : vector<1x64x128xf32> to vector<64x128xf32>
    %c2_19 = arith.constant 2 : index
    %c0_20 = arith.constant 0 : index
    %c0_21 = arith.constant 0 : index
    %18 = vector.load %arg2[%c2_19, %c0_20, %c0_21] : memref<3x128x8xf32, #tpu.memory_space<vmem>>, vector<1x128x8xf32>
    %19 = vector.shape_cast %18 : vector<1x128x8xf32> to vector<128x8xf32>
    %cst_22 = arith.constant dense<0.000000e+00> : vector<64x8xf32>
    %20 = tpu.matmul %17, %19, %cst_22 {dimension_numbers = #tpu.dot_dimension_numbers<[1], [0], [0], [1], [0, 0, 1, 1], [], []>} : vector<64x128xf32>, vector<128x8xf32>, vector<64x8xf32> -> vector<64x8xf32>
    %c2_23 = arith.constant 2 : index
    %c0_24 = arith.constant 0 : index
    %c0_25 = arith.constant 0 : index
    %21 = vector.load %arg3[%c2_23, %c0_24, %c0_25] : memref<3x64x8xf32, #tpu.memory_space<vmem>>, vector<1x64x8xf32>
    %22 = vector.shape_cast %21 : vector<1x64x8xf32> to vector<64x8xf32>
    %23 = arith.addf %20, %22 : vector<64x8xf32>
    %cst_26 = arith.constant dense<0.000000e+00> : vector<64x64xf32>
    %24 = tpu.matmul %7, %15, %cst_26 {dimension_numbers = #tpu.dot_dimension_numbers<[1], [1], [0], [0], [0, 0, 1, 0], [], []>} : vector<64x8xf32>, vector<64x8xf32>, vector<64x64xf32> -> vector<64x64xf32>
    %c0_27 = arith.constant 0 : index
    %c0_28 = arith.constant 0 : index
    %25 = vector.load %arg1[%c0_27, %c0_28] : memref<64x64xf32, #tpu.memory_space<vmem>>, vector<64x64xf32>
    %26 = arith.addf %24, %25 : vector<64x64xf32>
    %cst_29 = arith.constant dense<0xFF800000> : vector<64xf32>
    %27 = vector.multi_reduction <maximumf>, %26, %cst_29 [1] : vector<64x64xf32> to vector<64xf32>
    %28 = vector.shape_cast %27 : vector<64xf32> to vector<64x1xf32>
    %29 = vector.broadcast %28 : vector<64x1xf32> to vector<64x64xf32>
    %30 = arith.subf %26, %29 : vector<64x64xf32>
    %31 = math.exp %30 : vector<64x64xf32>
    %cst_30 = arith.constant dense<0.000000e+00> : vector<64xf32>
    %32 = vector.multi_reduction <add>, %31, %cst_30 [1] : vector<64x64xf32> to vector<64xf32>
    %33 = vector.shape_cast %32 : vector<64xf32> to vector<64x1xf32>
    %34 = vector.broadcast %33 : vector<64x1xf32> to vector<64x64xf32>
    %35 = arith.divf %31, %34 : vector<64x64xf32>
    %cst_31 = arith.constant dense<0.000000e+00> : vector<64x8xf32>
    %36 = tpu.matmul %35, %23, %cst_31 {dimension_numbers = #tpu.dot_dimension_numbers<[1], [0], [0], [1], [0, 0, 1, 1], [], []>} : vector<64x64xf32>, vector<64x8xf32>, vector<64x8xf32> -> vector<64x8xf32>
    %37 = vector.extract_strided_slice %36 {offsets = [0, 0], sizes = [16, 8], strides = [1, 1]} : vector<64x8xf32> to vector<16x8xf32>
    %38 = vector.extract_strided_slice %36 {offsets = [16, 0], sizes = [16, 8], strides = [1, 1]} : vector<64x8xf32> to vector<16x8xf32>
    %39 = vector.extract_strided_slice %36 {offsets = [32, 0], sizes = [16, 8], strides = [1, 1]} : vector<64x8xf32> to vector<16x8xf32>
    %40 = vector.extract_strided_slice %36 {offsets = [48, 0], sizes = [16, 8], strides = [1, 1]} : vector<64x8xf32> to vector<16x8xf32>
    %41 = tpu.concatenate %37, %38, %39, %40 in 1 : vector<16x8xf32>, vector<16x8xf32>, vector<16x8xf32>, vector<16x8xf32> -> vector<16x32xf32>
    %c0_32 = arith.constant 0 : index
    %c0_33 = arith.constant 0 : index
    %42 = vector.load %arg4[%c0_32, %c0_33] : memref<32x32xf32, #tpu.memory_space<vmem>>, vector<32x32xf32>
    %cst_34 = arith.constant dense<0.000000e+00> : vector<16x32xf32>
    %43 = tpu.matmul %41, %42, %cst_34 {dimension_numbers = #tpu.dot_dimension_numbers<[1], [0], [0], [1], [0, 0, 1, 1], [], []>} : vector<16x32xf32>, vector<32x32xf32>, vector<16x32xf32> -> vector<16x32xf32>
    %c0_35 = arith.constant 0 : index
    %c0_36 = arith.constant 0 : index
    %44 = vector.load %arg5[%c0_35, %c0_36] : memref<1x32xf32, #tpu.memory_space<vmem>>, vector<1x32xf32>
    %45 = vector.broadcast %44 : vector<1x32xf32> to vector<16x32xf32>
    %46 = arith.addf %43, %45 : vector<16x32xf32>
    %c0_37 = arith.constant 0 : index
    %c0_38 = arith.constant 0 : index
    %47 = vector.load %arg6[%c0_37, %c0_38] : memref<16x32xf32, #tpu.memory_space<vmem>>, vector<16x32xf32>
    tpu.vector_store %arg6[%c0_37, %c0_38], %46 {strides = array<i32>} : memref<16x32xf32, #tpu.memory_space<vmem>>, vector<16x32xf32>,
    return
  }
}

</mosaic_0001>

<bundles_post_ra>
// kernel: _mha_forward.1
= control target key start
LH: loop header
LB: loop body
LE: loop exit
PB: predicated region body
PF: predicated region fallthrough
CT: control target
= control target key end

     0   :  { %s1882_s0 = inlined_call_operand.vmem [shape: f32[3,64,128], index: 0, kind: input, shape index: {}]   ;;  %s1883_s1 = inlined_call_operand.vmem [shape: f32[64,64], index: 1, kind: input, shape index: {}]   ;;  %s1884_s2 = inlined_call_operand.vmem [shape: f32[3,128,8], index: 2, kind: input, shape index: {}]   ;;  %s1885_s3 = inlined_call_operand.vmem [shape: f32[3,64,8], index: 3, kind: input, shape index: {}]   ;;  %s1886_s4 = inlined_call_operand.vmem [shape: f32[32,32], index: 4, kind: input, shape index: {}]   ;;  %s1887_s5 = inlined_call_operand.vmem [shape: f32[1,32], index: 5, kind: input, shape index: {}]   ;;  %s1888_s6 = inlined_call_operand.hbm [shape: f32[16,32], index: 6, kind: output, shape index: {}]  }
   0x1   :  { %v987_v0 = vld [vmem:[%s1884_s2 + $0xf8] sm:$0xff]  ;;  %v986_v1 = vld [vmem:[%s1884_s2 + $0xf0] sm:$0xff]  ;;  %v985_v2 = vld [vmem:[%s1884_s2 + $0xe8] sm:$0xff] }
   0x2   :  { %1209 = vmatprep.subr.mxu1 %v987_v0  ;;  %v984_v3 = vld [vmem:[%s1884_s2 + $0xe0] sm:$0xff]  ;;  %v983_v5 = vld [vmem:[%s1884_s2 + $0xd8] sm:$0xff]  ;;  %v46_v7 = vld [vmem:[%s1884_s2 + $0x70] sm:$0xff] }
   0x3   :  { %1210 = vmatpush3.msra.mxu1 %v987_v0  ;;  %v964_v4 = vld [vmem:[%s1882_s0 + $0x40] sm:$0xff]  ;;  %v47_v6 = vld [vmem:[%s1884_s2 + $0x78] sm:$0xff]  ;;  %v982_v8 = vld [vmem:[%s1884_s2 + $0xd0] sm:$0xff] }
   0x4   :  { %1211 = vmatprep.subr.mxu1 %v986_v1  ;;  %1241 = vmatprep.mubr.f32.mxu1 %v964_v4  ;;  %v45_v9 = vld [vmem:[%s1884_s2 + $0x68] sm:$0xff]  ;;  %v44_v11 = vld [vmem:[%s1884_s2 + $0x60] sm:$0xff]  ;;  %v43_v13 = vld [vmem:[%s1884_s2 + $0x58] sm:$0xff] }
   0x5   :  { %1212 = vmatpush3.msra.mxu1 %v986_v1  ;;  %1165 = vmatprep.subr.mxu0 %v47_v6  ;;  %v981_v10 = vld [vmem:[%s1884_s2 + $0xc8] sm:$0xff]  ;;  %v980_v12 = vld [vmem:[%s1884_s2 + $0xc0] sm:$0xff]  ;;  %v979_v14 = vld [vmem:[%s1884_s2 + $0xb8] sm:$0xff] }
   0x6   :  { %1213 = vmatprep.subr.mxu1 %v985_v2  ;;  %1166 = vmatpush3.msra.mxu0 %v47_v6  ;;  %v42_v15 = vld [vmem:[%s1884_s2 + $0x50] sm:$0xff]  ;;  %v41_v17 = vld [vmem:[%s1884_s2 + $0x48] sm:$0xff] }
   0x7   :  { %1214 = vmatpush3.msra.mxu1 %v985_v2  ;;  %1167 = vmatprep.subr.mxu0 %v46_v7  ;;  %v978_v16 = vld [vmem:[%s1884_s2 + $0xb0] sm:$0xff] }
   0x8   :  { %1215 = vmatprep.subr.mxu1 %v984_v3  ;;  %1168 = vmatpush3.msra.mxu0 %v46_v7 }
   0x9   :  { %1216 = vmatpush3.msra.mxu1 %v984_v3  ;;  %1169 = vmatprep.subr.mxu0 %v45_v9 }
   0xa   :  { %1217 = vmatprep.subr.mxu1 %v983_v5  ;;  %1170 = vmatpush3.msra.mxu0 %v45_v9 }
   0xb   :  { %1218 = vmatpush3.msra.mxu1 %v983_v5  ;;  %1171 = vmatprep.subr.mxu0 %v44_v11 }
   0xc   :  { %1219 = vmatprep.subr.mxu1 %v982_v8  ;;  %1172 = vmatpush3.msra.mxu0 %v44_v11 }
   0xd   :  { %1220 = vmatpush3.msra.mxu1 %v982_v8  ;;  %1173 = vmatprep.subr.mxu0 %v43_v13 }
   0xe   :  { %1221 = vmatprep.subr.mxu1 %v981_v10  ;;  %1174 = vmatpush3.msra.mxu0 %v43_v13 }
   0xf   :  { %1222 = vmatpush3.msra.mxu1 %v981_v10 }
  0x10   :  { %1223 = vmatprep.subr.mxu1 %v980_v12 }
  0x11   :  { %1224 = vmatpush3.msra.mxu1 %v980_v12 }
  0x12   :  { %11 = vsyncpa [#allocation3], 0  ;;  %1225 = vmatprep.subr.mxu1 %v979_v14  ;;  %1175 = vmatprep.subr.mxu0 %v42_v15  ;;  %v977_v18 = vld [vmem:[%s1884_s2 + $0xa8] sm:$0xff]  ;;  %v40_v19 = vld [vmem:[%s1884_s2 + $0x40] sm:$0xff]  ;;  %vm449_vm0 = vcmask 64512   ;;  %vm603_vm1 = vcmask 523264  }
  0x13   :  { %1226 = vmatpush3.msra.mxu1 %v979_v14  ;;  %1176 = vmatpush3.msra.mxu0 %v42_v15  ;;  %v976_v20 = vld [vmem:[%s1884_s2 + $0xa0] sm:$0xff]  ;;  %v39_v21 = vld [vmem:[%s1884_s2 + $0x38] sm:$0xff]  ;;  %v38_v23 = vld [vmem:[%s1884_s2 + $0x30] sm:$0xff]  ;;  %s1423_s15 = smov 8   ;;  %s1424_s16 = smov 16   ;;  %vm847_vm2 = vcmask 130048  }
  0x14   :  { %1227 = vmatprep.subr.mxu1 %v978_v16  ;;  %1177 = vmatprep.subr.mxu0 %v41_v17  ;;  %v975_v22 = vld [vmem:[%s1884_s2 + $0x98] sm:$0xff]  ;;  %v974_v24 = vld [vmem:[%s1884_s2 + $0x90] sm:$0xff]  ;;  %v37_v25 = vld [vmem:[%s1884_s2 + $0x28] sm:$0xff]  ;;  %s1425_s17 = smov 24   ;;  %vm850_vm3 = vcmask 195584   ;;  %vm864_vm4 = vcmask 261120  }
  0x15   :  { %1228 = vmatpush3.msra.mxu1 %v978_v16  ;;  %1178 = vmatpush3.msra.mxu0 %v41_v17  ;;  %v973_v26 = vld [vmem:[%s1884_s2 + $0x88] sm:$0xff]  ;;  %v36_v27 = vld [vmem:[%s1884_s2 + $0x20] sm:$0xff]  ;;  %v35_v29 = vld [vmem:[%s1884_s2 + $0x18] sm:$0xff] }
  0x16   :  { %1229 = vmatprep.subr.mxu1 %v977_v18  ;;  %1179 = vmatprep.subr.mxu0 %v40_v19  ;;  %v972_v28 = vld [vmem:[%s1884_s2 + $0x80] sm:$0xff]  ;;  %v965_v30 = vld [vmem:[%s1882_s0 + $0x48] sm:$0xff]  ;;  %v34_v31 = vld [vmem:[%s1884_s2 + $0x10] sm:$0xff] }
  0x17   :  { %1230 = vmatpush3.msra.mxu1 %v977_v18  ;;  %1180 = vmatpush3.msra.mxu0 %v40_v19  ;;  %v966_v32 = vld [vmem:[%s1882_s0 + $0x50] sm:$0xff]  ;;  %v33_v33 = vld [vmem:[%s1884_s2 + $0x8] sm:$0xff]  ;;  %v24_v34 = vld [vmem:[%s1882_s0] sm:$0xff] }
  0x18   :  { %1231 = vmatprep.subr.mxu1 %v976_v20  ;;  %1181 = vmatprep.subr.mxu0 %v39_v21  ;;  %v967_v35 = vld [vmem:[%s1882_s0 + $0x58] sm:$0xff]  ;;  %v32_v36 = vld [vmem:[%s1884_s2] sm:$0xff]  ;;  %v25_v38 = vld [vmem:[%s1882_s0 + $0x8] sm:$0xff] }
  0x19   :  { %1232 = vmatpush3.msra.mxu1 %v976_v20  ;;  %1182 = vmatpush3.msra.mxu0 %v39_v21  ;;  %v968_v37 = vld [vmem:[%s1882_s0 + $0x60] sm:$0xff]  ;;  %v26_v39 = vld [vmem:[%s1882_s0 + $0x10] sm:$0xff]  ;;  %v969_v40 = vld [vmem:[%s1882_s0 + $0x68] sm:$0xff] }
  0x1a   :  { %1233 = vmatprep.subr.mxu1 %v975_v22  ;;  %1183 = vmatprep.subr.mxu0 %v38_v23  ;;  %v970_v41 = vld [vmem:[%s1882_s0 + $0x70] sm:$0xff]  ;;  %v27_v42 = vld [vmem:[%s1882_s0 + $0x18] sm:$0xff]  ;;  %v28_v43 = vld [vmem:[%s1882_s0 + $0x20] sm:$0xff] }
  0x1b   :  { %1234 = vmatpush3.msra.mxu1 %v975_v22  ;;  %1184 = vmatpush3.msra.mxu0 %v38_v23  ;;  %v971_v44 = vld [vmem:[%s1882_s0 + $0x78] sm:$0xff]  ;;  %v29_v45 = vld [vmem:[%s1882_s0 + $0x28] sm:$0xff]  ;;  %v30_v46 = vld [vmem:[%s1882_s0 + $0x30] sm:$0xff] }
  0x1c   :  { %1235 = vmatprep.subr.mxu1 %v974_v24  ;;  %1185 = vmatprep.subr.mxu0 %v37_v25  ;;  %v31_v47 = vld [vmem:[%s1882_s0 + $0x38] sm:$0xff]  ;;  %v48_v53 = vld [vmem:[%s1885_s3] sm:$0xff]  ;;  %v994_v60 = vld [vmem:[%s1885_s3 + $0x70] sm:$0xff] }
  0x1d   :  { %1236 = vmatpush3.msra.mxu1 %v974_v24  ;;  %1186 = vmatpush3.msra.mxu0 %v37_v25  ;;  %v995_v58 = vld [vmem:[%s1885_s3 + $0x78] sm:$0xff]  ;;  %v993_v0 = vld [vmem:[%s1885_s3 + $0x68] sm:$0xff]  ;;  %v992_v2 = vld [vmem:[%s1885_s3 + $0x60] sm:$0xff] }
  0x1e   :  { %1237 = vmatprep.subr.mxu1 %v973_v26  ;;  %1187 = vmatprep.subr.mxu0 %v36_v27  ;;  %v991_v4 = vld [vmem:[%s1885_s3 + $0x58] sm:$0xff]  ;;  %v990_v6 = vld [vmem:[%s1885_s3 + $0x50] sm:$0xff]  ;;  %v989_v9 = vld [vmem:[%s1885_s3 + $0x48] sm:$0xff] }
  0x1f   :  { %1238 = vmatpush3.msra.mxu1 %v973_v26  ;;  %1188 = vmatpush3.msra.mxu0 %v36_v27  ;;  %v988_v12 = vld [vmem:[%s1885_s3 + $0x40] sm:$0xff]  ;;  %v50_v15 = vld [vmem:[%s1885_s3 + $0x10] sm:$0xff]  ;;  %v49_v17 = vld [vmem:[%s1885_s3 + $0x8] sm:$0xff] }
  0x20   :  { %1239 = vmatprep.subr.mxu1 %v972_v28  ;;  %1189 = vmatprep.subr.mxu0 %v35_v29  ;;  %v52_v20 = vld [vmem:[%s1885_s3 + $0x20] sm:$0xff]  ;;  %v51_v22 = vld [vmem:[%s1885_s3 + $0x18] sm:$0xff]  ;;  %v53_v23 = vld [vmem:[%s1885_s3 + $0x28] sm:$0xff] }
  0x21   :  { %1240 = vmatpush3.msra.mxu1 %v972_v28  ;;  %1190 = vmatpush3.msra.mxu0 %v35_v29  ;;  %v54_v27 = vld [vmem:[%s1885_s3 + $0x30] sm:$0xff]  ;;  %v55_v29 = vld [vmem:[%s1885_s3 + $0x38] sm:$0xff] }
  0x22   :  { %1242 = vmatmul.mubr.f32.vlgmr.msra.gmra.mxu1 %v965_v30  ;;  %1191 = vmatprep.subr.mxu0 %v34_v31 }
  0x23   :  { %1244 = vmatprep.mubr.f32.mxu1 %v966_v32  ;;  %1192 = vmatpush3.msra.mxu0 %v34_v31  ;;  %v1019_v32 = vld [vmem:[%s1884_s2 + $0x178] sm:$0xff] }
  0x24   :  { %1193 = vmatprep.subr.mxu0 %v33_v33  ;;  %1197 = vmatprep.mubr.f32.mxu0 %v24_v34  ;;  %v1017_v34 = vld [vmem:[%s1884_s2 + $0x168] sm:$0xff] }
  0x25   :  { %1194 = vmatpush3.msra.mxu0 %v33_v33  ;;  %v1018_v33 = vld [vmem:[%s1884_s2 + $0x170] sm:$0xff] }
  0x26   :  { %1245 = vmatmul.mubr.f32.gmra.mxu1 %v967_v35  ;;  %1195 = vmatprep.subr.mxu0 %v32_v36  ;;  %v1016_v35 = vld [vmem:[%s1884_s2 + $0x160] sm:$0xff] }
  0x27   :  { %1247 = vmatprep.mubr.f32.mxu1 %v968_v37  ;;  %1196 = vmatpush3.msra.mxu0 %v32_v36  ;;  %v996_v36 = vld [vmem:[%s1882_s0 + $0x80] sm:$0xff]  ;;  %v1015_v37 = vld [vmem:[%s1884_s2 + $0x158] sm:$0xff] }
  0x28   :  { %1198 = vmatmul.mubr.f32.vlgmr.msra.gmra.mxu0 %v25_v38  ;;  %1253 = vmatprep.subr.mxu0 %v1019_v32  ;;  %v1014_v38 = vld [vmem:[%s1884_s2 + $0x150] sm:$0xff] }
  0x29   :  { %1200 = vmatprep.mubr.f32.mxu0 %v26_v39  ;;  %1254 = vmatpush3.msra.mxu0 %v1019_v32  ;;  %v1013_v39 = vld [vmem:[%s1884_s2 + $0x148] sm:$0xff] }
  0x2a   :  { %1248 = vmatmul.mubr.f32.gmra.mxu1 %v969_v40  ;;  %1255 = vmatprep.subr.mxu0 %v1018_v33  ;;  %v1012_v40 = vld [vmem:[%s1884_s2 + $0x140] sm:$0xff] }
  0x2b   :  { %1250 = vmatprep.mubr.f32.mxu1 %v970_v41  ;;  %1256 = vmatpush3.msra.mxu0 %v1018_v33  ;;  %v1011_v41 = vld [vmem:[%s1884_s2 + $0x138] sm:$0xff]  ;;  %v1026_v33 = vld [vmem:[%s1885_s3 + $0xb0] sm:$0xff] }
  0x2c   :  { %1201 = vmatmul.mubr.f32.gmra.mxu0 %v27_v42  ;;  %1257 = vmatprep.subr.mxu0 %v1017_v34  ;;  %v1010_v42 = vld [vmem:[%s1884_s2 + $0x130] sm:$0xff] }
  0x2d   :  { %1203 = vmatprep.mubr.f32.mxu0 %v28_v43  ;;  %1258 = vmatpush3.msra.mxu0 %v1017_v34  ;;  %v1009_v43 = vld [vmem:[%s1884_s2 + $0x128] sm:$0xff] }
  0x2e   :  { %1251 = vmatmul.mubr.f32.gmra.mxu1 %v971_v44  ;;  %1259 = vmatprep.subr.mxu0 %v1016_v35  ;;  %v1008_v44 = vld [vmem:[%s1884_s2 + $0x120] sm:$0xff] }
  0x2f   :  { %1260 = vmatpush3.msra.mxu0 %v1016_v35  ;;  %v1024_v35 = vld [vmem:[%s1885_s3 + $0xa0] sm:$0xff] }
  0x30   :  { %1204 = vmatmul.mubr.f32.gmra.mxu0 %v29_v45  ;;  %1261 = vmatprep.subr.mxu0 %v1015_v37  ;;  %v1007_v45 = vld [vmem:[%s1884_s2 + $0x118] sm:$0xff] }
  0x31   :  { %1206 = vmatprep.mubr.f32.mxu0 %v30_v46  ;;  %1262 = vmatpush3.msra.mxu0 %v1015_v37  ;;  %v1006_v46 = vld [vmem:[%s1884_s2 + $0x110] sm:$0xff] }
  0x32   :  { %1263 = vmatprep.subr.mxu0 %v1014_v38 }
  0x33   :  { %1264 = vmatpush3.msra.mxu0 %v1014_v38 }
  0x34   :  { %1207 = vmatmul.mubr.f32.gmra.mxu0 %v31_v47  ;;  %1265 = vmatprep.subr.mxu0 %v1013_v39  ;;  %v1005_v47 = vld [vmem:[%s1884_s2 + $0x108] sm:$0xff] }
  0x35   :  { %1285 = vmatprep.mubr.f32.mxu0 %v996_v36  ;;  %1266 = vmatpush3.msra.mxu0 %v1013_v39  ;;  %v1023_v39 = vld [vmem:[%s1885_s3 + $0x98] sm:$0xff] }
  0x36   :  { %1267 = vmatprep.subr.mxu0 %v1012_v40 }
  0x37   :  { %1268 = vmatpush3.msra.mxu0 %v1012_v40 }
  0x38   :  { %1269 = vmatprep.subr.mxu0 %v1011_v41 }
  0x39   :  { %1270 = vmatpush3.msra.mxu0 %v1011_v41  ;;  %v1022_v41 = vld [vmem:[%s1885_s3 + $0x90] sm:$0xff] }
  0x3a   :  { %1271 = vmatprep.subr.mxu0 %v1010_v42 }
  0x3b   :  { %1272 = vmatpush3.msra.mxu0 %v1010_v42 }
  0x3c   :  { %1273 = vmatprep.subr.mxu0 %v1009_v43 }
  0x3d   :  { %1274 = vmatpush3.msra.mxu0 %v1009_v43  ;;  %v1021_v43 = vld [vmem:[%s1885_s3 + $0x88] sm:$0xff] }
  0x3e   :  { %1275 = vmatprep.subr.mxu0 %v1008_v44 }
  0x3f   :  { %1276 = vmatpush3.msra.mxu0 %v1008_v44 }
  0x40   :  { %1277 = vmatprep.subr.mxu0 %v1007_v45 }
  0x41   :  { %1278 = vmatpush3.msra.mxu0 %v1007_v45  ;;  %v1020_v45 = vld [vmem:[%s1885_s3 + $0x80] sm:$0xff] }
  0x42   :  { %1279 = vmatprep.subr.mxu0 %v1006_v46 }
  0x43   :  { %1280 = vmatpush3.msra.mxu0 %v1006_v46 }
  0x44   :  { %1281 = vmatprep.subr.mxu0 %v1005_v47 }
  0x45   :  { %1282 = vmatpush3.msra.mxu0 %v1005_v47 }
  0xe2   :  { %v1243_v48 = vpop.f32.mrf.mxu1 }
  0xe3   :  { %v268_v10 = vadd.f32 %v1243_v48, %v989_v9  ;;  %v1004_v48 = vld [vmem:[%s1884_s2 + $0x100] sm:$0xff]  ;;  %v446_v9 = vld [vmem:[%s1883_s1 + $0x28] sm:$0xff] }
  0xe4   :  { %v262_v49 = vpop.f32.mrf.mxu1  ;;  %1283 = vmatprep.subr.mxu0 %v1004_v48 }
  0xe5   :  { %v263_v14 = vadd.f32 %v988_v12, %v262_v49  ;;  %v997_v49 = vld [vmem:[%s1882_s0 + $0x88] sm:$0xff]  ;;  %1284 = vmatpush3.msra.mxu0 %v1004_v48 }
  0xe6   :  { %v1246_v50 = vpop.f32.mrf.mxu1  ;;  %1286 = vmatmul.mubr.f32.vlgmr.msra.gmra.mxu0 %v997_v49 }
  0xe7   :  { %v278_v5 = vadd.f32 %v1246_v50, %v991_v4  ;;  %v998_v50 = vld [vmem:[%s1882_s0 + $0x90] sm:$0xff] }
  0xe8   :  { %v272_v51 = vpop.f32.mrf.mxu1  ;;  %v1199_v52 = vpop.f32.mrf.mxu0  ;;  %1288 = vmatprep.mubr.f32.mxu0 %v998_v50 }
  0xe9   :  { %v273_v7 = vadd.f32 %v990_v6, %v272_v51  ;;  %v128_v19 = vadd.f32 %v1199_v52, %v49_v17  ;;  %v999_v51 = vld [vmem:[%s1882_s0 + $0x98] sm:$0xff]  ;;  %v1000_v52 = vld [vmem:[%s1882_s0 + $0xa0] sm:$0xff] }
  0xea   :  { %v1249_v54 = vpop.f32.mrf.mxu1  ;;  %v122_v55 = vpop.f32.mrf.mxu0  ;;  %1289 = vmatmul.mubr.f32.gmra.mxu0 %v999_v51  ;;  %v448_v17 = vld [vmem:[%s1883_s1 + $0x38] sm:$0xff] }
  0xeb   :  { %v123_v56 = vadd.f32 %v122_v55, %v48_v53  ;;  %v288_v1 = vadd.f32 %v1249_v54, %v993_v0  ;;  %1291 = vmatprep.mubr.f32.mxu0 %v1000_v52  ;;  %v1001_v53 = vld [vmem:[%s1882_s0 + $0xa8] sm:$0xff]  ;;  %v1002_v54 = vld [vmem:[%s1882_s0 + $0xb0] sm:$0xff]  ;;  %v1003_v55 = vld [vmem:[%s1882_s0 + $0xb8] sm:$0xff] }
  0xec   :  { %v282_v57 = vpop.f32.mrf.mxu1  ;;  %v1202_v8 = vpop.f32.mrf.mxu0 }
  0xed   :  { %1313 = vmatprep.mubr.msk.f32.mxu1 %vm449_vm0, %v123_v56  ;;  %v283_v3 = vadd.f32 %v992_v2, %v282_v57  ;;  %v138_v25 = vadd.f32 %v1202_v8, %v51_v22  ;;  %v441_v57 = vld [vmem:[%s1883_s1] sm:$0xff] }
  0xee   :  { %v1252_v59 = vpop.f32.mrf.mxu1  ;;  %v132_v11 = vpop.f32.mrf.mxu0  ;;  %1292 = vmatmul.mubr.f32.gmra.mxu0 %v1001_v53 }
  0xef   :  { %v298_v61 = vadd.f32 %v1252_v59, %v995_v58  ;;  %v133_v18 = vadd.f32 %v132_v11, %v50_v15  ;;  %1294 = vmatprep.mubr.f32.mxu0 %v1002_v54  ;;  %v442_v58 = vld [vmem:[%s1883_s1 + $0x8] sm:$0xff] }
  0xf0   :  { %v292_v62 = vpop.f32.mrf.mxu1  ;;  %v1205_v13 = vpop.f32.mrf.mxu0 }
  0xf1   :  { %v293_v63 = vadd.f32 %v994_v60, %v292_v62  ;;  %1297 = vmatprep.subr.msk.mxu1 %vm449_vm0, %v298_v61  ;;  %v148_v28 = vadd.f32 %v1205_v13, %v53_v23  ;;  %v443_v62 = vld [vmem:[%s1883_s1 + $0x10] sm:$0xff] }
  0xf2   :  { %1298 = vmatpush3.xpose.msk.msra.mxu1 %vm449_vm0, %v298_v61  ;;  %v142_v16 = vpop.f32.mrf.mxu0  ;;  %1295 = vmatmul.mubr.f32.gmra.mxu0 %v1003_v55  ;;  %v447_v13 = vld [vmem:[%s1883_s1 + $0x30] sm:$0xff] }
  0xf3   :  { %1299 = vmatprep.subr.msk.mxu1 %vm449_vm0, %v293_v63  ;;  %v143_v24 = vadd.f32 %v142_v16, %v52_v20 }
  0xf4   :  { %v1208_v21 = vpop.f32.mrf.mxu0 }
  0xf5   :  { %v158_v31 = vadd.f32 %v1208_v21, %v55_v29 }
  0xf6   :  { %1300 = vmatpush3.xpose.msk.msra.mxu1 %vm449_vm0, %v293_v63  ;;  %v152_v26 = vpop.f32.mrf.mxu0 }
  0xf7   :  { %1301 = vmatprep.subr.msk.mxu1 %vm449_vm0, %v288_v1  ;;  %v153_v30 = vadd.f32 %v152_v26, %v54_v27 }
  0xfa   :  { %1302 = vmatpush3.xpose.msk.msra.mxu1 %vm449_vm0, %v288_v1  ;;  %v444_v1 = vld [vmem:[%s1883_s1 + $0x18] sm:$0xff] }
  0xfb   :  { %1303 = vmatprep.subr.msk.mxu1 %vm449_vm0, %v283_v3 }
  0xfe   :  { %1304 = vmatpush3.xpose.msk.msra.mxu1 %vm449_vm0, %v283_v3 }
  0xff   :  { %1305 = vmatprep.subr.msk.mxu1 %vm449_vm0, %v278_v5 }
 0x102   :  { %1306 = vmatpush3.xpose.msk.msra.mxu1 %vm449_vm0, %v278_v5  ;;  %v445_v5 = vld [vmem:[%s1883_s1 + $0x20] sm:$0xff]  ;;  %s1426_s1 = smov [#allocation2]  }
 0x103   :  { %1307 = vmatprep.subr.msk.mxu1 %vm449_vm0, %v273_v7  ;;  %s953_s19 = sshll.u32 %s1426_s1, 4  ;;  %s954_s19 = int_to_ptr.vmem [resolvable:$true] %s953_s19 }
 0x104   :  { %s1401_s20 = scalar_lea.vmem %s954_s19, 256  ;;  %p1406_p1 = scmp.lt.s32.totalorder %s954_s19, %s954_s19 }
 0x105   :  { %p1402_p0 = scmp.ne.s32.totalorder %s954_s19, %s1401_s20  ;;  %p1407_p2 = scmp.lt.s32.totalorder %s1401_s20, %s1401_s20 }
 0x106   :  { %1308 = vmatpush3.xpose.msk.msra.mxu1 %vm449_vm0, %v273_v7 }
 0x107   :  { %1309 = vmatprep.subr.msk.mxu1 %vm449_vm0, %v268_v10  ;;  %p1408_p3 = por %p1407_p2, %p1406_p1 }
 0x109   :  { %p1409_p4 = pnand %p1408_p3, %p1402_p0 }
 0x10a   :  { %1310 = vmatpush3.xpose.msk.msra.mxu1 %vm449_vm0, %v268_v10 }
 0x10b   :  { %1311 = vmatprep.subr.msk.mxu1 %vm449_vm0, %v263_v14 }
 0x10e   :  { %1312 = vmatpush3.xpose.msk.msra.mxu1 %vm449_vm0, %v263_v14 }
 0x111   :  { %1314 = vmatmul.mubr.msk.f32.vlgmr.msra.gmra.mxu1 %vm449_vm0, %v128_v19 }
 0x112   :  { %1316 = vmatprep.mubr.msk.f32.mxu1 %vm449_vm0, %v133_v18 }
 0x115   :  { %1317 = vmatmul.mubr.msk.f32.gmra.mxu1 %vm449_vm0, %v138_v25 }
 0x116   :  { %1319 = vmatprep.mubr.msk.f32.mxu1 %vm449_vm0, %v143_v24 }
 0x119   :  { %1320 = vmatmul.mubr.msk.f32.gmra.mxu1 %vm449_vm0, %v148_v28 }
 0x11a   :  { %1322 = vmatprep.mubr.msk.f32.mxu1 %vm449_vm0, %v153_v30  ;;  %v1027_v30 = vld [vmem:[%s1885_s3 + $0xb8] sm:$0xff] }
 0x11d   :  { %1323 = vmatmul.mubr.msk.f32.gmra.mxu1 %vm449_vm0, %v158_v31  ;;  %v1025_v31 = vld [vmem:[%s1885_s3 + $0xa8] sm:$0xff] }
 0x1a6   :  { %v1287_v24 = vpop.f32.mrf.mxu0 }
 0x1a7   :  { %v408_v46 = vadd.f32 %v1287_v24, %v1021_v43 }
 0x1a8   :  { %v402_v25 = vpop.f32.mrf.mxu0 }
 0x1a9   :  { %v403_v49 = vadd.f32 %v1020_v45, %v402_v25 }
 0x1aa   :  { %v1290_v26 = vpop.f32.mrf.mxu0 }
 0x1ab   :  { %v418_v42 = vadd.f32 %v1290_v26, %v1023_v39 }
 0x1ac   :  { %v412_v27 = vpop.f32.mrf.mxu0 }
 0x1ad   :  { %v413_v44 = vadd.f32 %v1022_v41, %v412_v27 }
 0x1ae   :  { %v1293_v28 = vpop.f32.mrf.mxu0 }
 0x1af   :  { %v428_v37 = vadd.f32 %v1293_v28, %v1025_v31 }
 0x1b0   :  { %v422_v29 = vpop.f32.mrf.mxu0 }
 0x1b1   :  { %v423_v40 = vadd.f32 %v1024_v35, %v422_v29 }
 0x1b2   :  { %v1296_v32 = vpop.f32.mrf.mxu0 }
 0x1b3   :  { %v438_v34 = vadd.f32 %v1296_v32, %v1027_v30 }
 0x1b4   :  { %v432_v36 = vpop.f32.mrf.mxu0 }
 0x1b5   :  { %v433_v38 = vadd.f32 %v1026_v33, %v432_v36  ;;  %1325 = vmatprep.subr.mxu0 %v438_v34 }
 0x1b6   :  { %1326 = vmatpush3.msra.mxu0 %v438_v34 }
 0x1b7   :  { %1327 = vmatprep.subr.mxu0 %v433_v38 }
 0x1b8   :  { %1328 = vmatpush3.msra.mxu0 %v433_v38 }
 0x1b9   :  { %1329 = vmatprep.subr.mxu0 %v428_v37 }
 0x1ba   :  { %1330 = vmatpush3.msra.mxu0 %v428_v37 }
 0x1bb   :  { %1331 = vmatprep.subr.mxu0 %v423_v40 }
 0x1bc   :  { %1332 = vmatpush3.msra.mxu0 %v423_v40 }
 0x1bd   :  { %1333 = vmatprep.subr.mxu0 %v418_v42 }
 0x1be   :  { %1334 = vmatpush3.msra.mxu0 %v418_v42 }
 0x1bf   :  { %1335 = vmatprep.subr.mxu0 %v413_v44 }
 0x1c0   :  { %1336 = vmatpush3.msra.mxu0 %v413_v44 }
 0x1c1   :  { %1337 = vmatprep.subr.mxu0 %v408_v46 }
 0x1c2   :  { %1338 = vmatpush3.msra.mxu0 %v408_v46 }
 0x1c3   :  { %1339 = vmatprep.subr.mxu0 %v403_v49 }
 0x1c4   :  { %1340 = vmatpush3.msra.mxu0 %v403_v49  ;;  %v855_v49 = vld [vmem:[%s1886_s4 + $0x10] sm:$0xff] }
 0x1d1   :  { %v1315_v56 = vpop.f32.mrf.mxu1 }
 0x1d2   :  { %v1762_v63 = vadd.f32 %v1315_v56, %v442_v58 }
 0x1d3   :  { %v564_v59 = vpop.f32.mrf.mxu1 }
 0x1d4   :  { %v1757_v60 = vadd.f32 %v564_v59, %v441_v57  ;;  %v607_v8 = vsel %vm603_vm1, %v1762_v63, -inf }
 0x1d5   :  { %v1318_v61 = vpop.f32.mrf.mxu1 }
 0x1d6   :  { %v604_v0 = vsel %vm603_vm1, %v1757_v60, -inf  ;;  %v1774_v6 = vadd.f32 %v1318_v61, %v444_v1 }
 0x1d7   :  { %v574_v2 = vpop.f32.mrf.mxu1  ;;  %605 = vmax.xlane.f32.xlu0 %v604_v0 }
 0x1d8   :  { %v1769_v3 = vadd.f32 %v574_v2, %v443_v62  ;;  %v613_v15 = vsel %vm603_vm1, %v1774_v6, -inf }
 0x1d9   :  { %v1321_v4 = vpop.f32.mrf.mxu1 }
 0x1da   :  { %v610_v7 = vsel %vm603_vm1, %v1769_v3, -inf  ;;  %v1788_v14 = vadd.f32 %v1321_v4, %v446_v9 }
 0x1db   :  { %v584_v10 = vpop.f32.mrf.mxu1  ;;  %611 = vmax.xlane.f32.xlu1 %v610_v7  ;;  %608 = vmax.xlane.f32.xlu0 %v607_v8 }
 0x1dc   :  { %v1783_v11 = vadd.f32 %v584_v10, %v445_v5  ;;  %v619_v21 = vsel %vm603_vm1, %v1788_v14, -inf }
 0x1dd   :  { %v1324_v12 = vpop.f32.mrf.mxu1 }
 0x1de   :  { %v616_v16 = vsel %vm603_vm1, %v1783_v11, -inf  ;;  %v1799_v20 = vadd.f32 %v1324_v12, %v448_v17 }
 0x1df   :  { %v594_v18 = vpop.f32.mrf.mxu1  ;;  %614 = vmax.xlane.f32.xlu1 %v613_v15  ;;  %617 = vmax.xlane.f32.xlu0 %v616_v16 }
 0x1e0   :  { %v1797_v19 = vadd.f32 %v594_v18, %v447_v13  ;;  %v625_v23 = vsel %vm603_vm1, %v1799_v20, -inf }
 0x1e2   :  { %v622_v22 = vsel %vm603_vm1, %v1797_v19, -inf }
 0x1e3   :  { %620 = vmax.xlane.f32.xlu1 %v619_v21  ;;  %623 = vmax.xlane.f32.xlu0 %v622_v22 }
 0x1e7   :  { %626 = vmax.xlane.f32.xlu1 %v625_v23 }
 0x260   :  { %v606_v47 = vpop.xlane.xlu0 %605 }
 0x261   :  { %v628_v48 = vsub.f32 %v1757_v60, %v606_v47 }
 0x263   :  { %v636_v50 = vmul.f32 1.442695, %v628_v48  ;;  %v856_v48 = vld [vmem:[%s1886_s4 + $0x18] sm:$0xff] }
 0x264   :  { %v612_v51 = vpop.xlane.xlu1 %611  ;;  %v609_v52 = vpop.xlane.xlu0 %608  ;;  %1353 = vmatprep.subr.mxu1 %v856_v48 }
 0x265   :  { %1369 = vpow2.f32 %v636_v50  ;;  %v630_v53 = vsub.f32 %v1769_v3, %v612_v51  ;;  %v629_v54 = vsub.f32 %v1762_v63, %v609_v52  ;;  %1354 = vmatpush3.msra.mxu1 %v856_v48  ;;  %v854_v50 = vld [vmem:[%s1886_s4 + $0x8] sm:$0xff]  ;;  %v853_v52 = vld [vmem:[%s1886_s4] sm:$0xff] }
 0x266   :  { %1355 = vmatprep.subr.mxu1 %v855_v49 }
 0x267   :  { %v640_v55 = vmul.f32 1.442695, %v630_v53  ;;  %v638_v56 = vmul.f32 1.442695, %v629_v54  ;;  %1356 = vmatpush3.msra.mxu1 %v855_v49 }
 0x268   :  { %v615_v57 = vpop.xlane.xlu1 %614  ;;  %v618_v58 = vpop.xlane.xlu0 %617  ;;  %1357 = vmatprep.subr.mxu1 %v854_v50 }
 0x269   :  { %1371 = vpow2.f32 %v640_v55  ;;  %v631_v59 = vsub.f32 %v1774_v6, %v615_v57  ;;  %v632_v60 = vsub.f32 %v1783_v11, %v618_v58  ;;  %1358 = vmatpush3.msra.mxu1 %v854_v50 }
 0x26a   :  { %1373 = vpow2.f32 %v638_v56  ;;  %1359 = vmatprep.subr.mxu1 %v853_v52 }
 0x26b   :  { %v642_v61 = vmul.f32 1.442695, %v631_v59  ;;  %v644_v62 = vmul.f32 1.442695, %v632_v60  ;;  %1360 = vmatpush3.msra.mxu1 %v853_v52 }
 0x26c   :  { %v621_v0 = vpop.xlane.xlu1 %620  ;;  %v624_v1 = vpop.xlane.xlu0 %623 }
 0x26d   :  { %1375 = vpow2.f32 %v642_v61  ;;  %v633_v2 = vsub.f32 %v1788_v14, %v621_v0  ;;  %v634_v63 = vsub.f32 %v1797_v19, %v624_v1 }
 0x26e   :  { %1377 = vpow2.f32 %v644_v62 }
 0x26f   :  { %v646_v3 = vmul.f32 1.442695, %v633_v2  ;;  %v648_v4 = vmul.f32 1.442695, %v634_v63 }
 0x270   :  { %v627_v5 = vpop.xlane.xlu1 %626 }
 0x271   :  { %1379 = vpow2.f32 %v646_v3  ;;  %v635_v7 = vsub.f32 %v1799_v20, %v627_v5 }
 0x272   :  { %v1370_v6 = vpop.eup %1369  ;;  %1381 = vpow2.f32 %v648_v4 }
 0x273   :  { %v650_v8 = vmul.f32 1.442695, %v635_v7  ;;  %v652_v9 = vsel %vm603_vm1, %v1370_v6, 0.0 }
 0x274   :  { %653 = vadd.xlane.f32.xlu0 %v652_v9 }
 0x275   :  { %1383 = vpow2.f32 %v650_v8  ;;  %v1052_v8 = vld [vmem:[%s1887_s5] ss:$0 sm:$0xff] }
 0x276   :  { %v1372_v10 = vpop.eup %1371 }
 0x277   :  { %v1374_v11 = vpop.eup %1373  ;;  %v658_v12 = vsel %vm603_vm1, %v1372_v10, 0.0 }
 0x278   :  { %659 = vadd.xlane.f32.xlu0 %v658_v12  ;;  %v655_v13 = vsel %vm603_vm1, %v1374_v11, 0.0 }
 0x279   :  { %656 = vadd.xlane.f32.xlu1 %v655_v13 }
 0x27a   :  { %v1376_v14 = vpop.eup %1375 }
 0x27b   :  { %v1378_v15 = vpop.eup %1377  ;;  %v661_v16 = vsel %vm603_vm1, %v1376_v14, 0.0 }
 0x27c   :  { %v664_v17 = vsel %vm603_vm1, %v1378_v15, 0.0 }
 0x27d   :  { %662 = vadd.xlane.f32.xlu1 %v661_v16  ;;  %665 = vadd.xlane.f32.xlu0 %v664_v17 }
 0x27e   :  { %v1380_v18 = vpop.eup %1379 }
 0x27f   :  { %v1382_v19 = vpop.eup %1381  ;;  %v667_v20 = vsel %vm603_vm1, %v1380_v18, 0.0 }
 0x280   :  { %v670_v21 = vsel %vm603_vm1, %v1382_v19, 0.0 }
 0x281   :  { %668 = vadd.xlane.f32.xlu1 %v667_v20  ;;  %671 = vadd.xlane.f32.xlu0 %v670_v21 }
 0x282   :  { %v1384_v22 = vpop.eup %1383 }
 0x283   :  { %v673_v23 = vsel %vm603_vm1, %v1384_v22, 0.0 }
 0x285   :  { %674 = vadd.xlane.f32.xlu1 %v673_v23 }
 0x2fd   :  { %v654_v24 = vpop.xlane.xlu0 %653 }
 0x2fe   :  { %1385 = vrcp.f32 %v654_v24 }
 0x301   :  { %v660_v25 = vpop.xlane.xlu0 %659 }
 0x302   :  { %v657_v26 = vpop.xlane.xlu1 %656  ;;  %1387 = vrcp.f32 %v660_v25 }
 0x303   :  { %1389 = vrcp.f32 %v657_v26 }
 0x306   :  { %v663_v27 = vpop.xlane.xlu1 %662  ;;  %v666_v28 = vpop.xlane.xlu0 %665 }
 0x307   :  { %1391 = vrcp.f32 %v663_v27 }
 0x308   :  { %1393 = vrcp.f32 %v666_v28 }
 0x30a   :  { %v669_v29 = vpop.xlane.xlu1 %668  ;;  %v672_v30 = vpop.xlane.xlu0 %671 }
 0x30b   :  { %v1386_v31 = vpop.eup %1385  ;;  %1395 = vrcp.f32 %v669_v29 }
 0x30c   :  { %1397 = vrcp.f32 %v672_v30  ;;  %v677_v32 = vmul.f32 %v1386_v31, %v1370_v6 }
 0x30e   :  { %v675_v33 = vpop.xlane.xlu1 %674  ;;  %1341 = vmatprep.mubr.msk.f32.mxu0 %vm603_vm1, %v677_v32 }
 0x30f   :  { %v1388_v34 = vpop.eup %1387  ;;  %1399 = vrcp.f32 %v675_v33 }
 0x310   :  { %v1390_v35 = vpop.eup %1389  ;;  %v681_v36 = vmul.f32 %v1388_v34, %v1372_v10 }
 0x311   :  { %v679_v37 = vmul.f32 %v1390_v35, %v1374_v11 }
 0x313   :  { %1342 = vmatmul.mubr.msk.f32.vlgmr.msra.gmra.mxu0 %vm603_vm1, %v679_v37 }
 0x314   :  { %v1392_v38 = vpop.eup %1391  ;;  %1344 = vmatprep.mubr.msk.f32.mxu0 %vm603_vm1, %v681_v36 }
 0x315   :  { %v1394_v39 = vpop.eup %1393  ;;  %v683_v40 = vmul.f32 %v1392_v38, %v1376_v14 }
 0x316   :  { %v685_v41 = vmul.f32 %v1394_v39, %v1378_v15 }
 0x317   :  { %1345 = vmatmul.mubr.msk.f32.gmra.mxu0 %vm603_vm1, %v683_v40 }
 0x318   :  { %v1396_v42 = vpop.eup %1395  ;;  %1347 = vmatprep.mubr.msk.f32.mxu0 %vm603_vm1, %v685_v41 }
 0x319   :  { %v1398_v43 = vpop.eup %1397  ;;  %v687_v44 = vmul.f32 %v1396_v42, %v1380_v18 }
 0x31a   :  { %v689_v45 = vmul.f32 %v1398_v43, %v1382_v19 }
 0x31b   :  { %1348 = vmatmul.mubr.msk.f32.gmra.mxu0 %vm603_vm1, %v687_v44 }
 0x31c   :  { %v1400_v46 = vpop.eup %1399  ;;  %1350 = vmatprep.mubr.msk.f32.mxu0 %vm603_vm1, %v689_v45 }
 0x31d   :  { %v691_v47 = vmul.f32 %v1400_v46, %v1384_v22 }
 0x31f   :  { %1351 = vmatmul.mubr.msk.f32.gmra.mxu0 %vm603_vm1, %v691_v47 }
 0x3d3   :  { %v1343_v51 = vpop.f32.mrf.mxu0 }
 0x3d5   :  { %v782_v53 = vpop.f32.mrf.mxu0 }
 0x3d7   :  { %v1346_v54 = vpop.f32.mrf.mxu0 }
 0x3d8   :  { %825 = vrot.lane.b32.xlu1 %v1346_v54, %s1423_s15 }
 0x3d9   :  { %v792_v55 = vpop.f32.mrf.mxu0 }
 0x3da   :  { %823 = vrot.lane.b32.xlu0 %v792_v55, %s1423_s15 }
 0x3db   :  { %v1349_v56 = vpop.f32.mrf.mxu0 }
 0x3dc   :  { %833 = vrot.lane.b32.xlu1 %v1349_v56, %s1424_s16 }
 0x3dd   :  { %v802_v57 = vpop.f32.mrf.mxu0 }
 0x3df   :  { %v1352_v58 = vpop.f32.mrf.mxu0 }
 0x3e0   :  { %831 = vrot.lane.b32.xlu1 %v802_v57, %s1424_s16 }
 0x3e1   :  { %v812_v59 = vpop.f32.mrf.mxu0 }
 0x3e2   :  { %839 = vrot.lane.b32.xlu0 %v812_v59, %s1425_s17 }
 0x3e4   :  { %841 = vrot.lane.b32.xlu1 %v1352_v58, %s1425_s17 }
 0x44a   :  { %v826_v60 = vpop.permute.xlu1 %825 }
 0x44b   :  { %v846_v3 = vsel %vm449_vm0, %v1343_v51, %v826_v60 }
 0x44c   :  { %v824_v62 = vpop.permute.xlu0 %823 }
 0x44d   :  { %v845_v0 = vsel %vm449_vm0, %v782_v53, %v824_v62 }
 0x44e   :  { %v834_v61 = vpop.permute.xlu1 %833 }
 0x44f   :  { %v849_v5 = vsel %vm847_vm2, %v846_v3, %v834_v61 }
 0x452   :  { %v832_v1 = vpop.permute.xlu1 %831 }
 0x453   :  { %v848_v2 = vsel %vm847_vm2, %v845_v0, %v832_v1 }
 0x454   :  { %v840_v63 = vpop.permute.xlu0 %839 }
 0x455   :  { %v851_v4 = vsel %vm850_vm3, %v848_v2, %v840_v63 }
 0x456   :  { %v842_v7 = vpop.permute.xlu1 %841  ;;  %1361 = vmatprep.mubr.msk.f32.mxu1 %vm864_vm4, %v851_v4 }
 0x457   :  { %v852_v6 = vsel %vm850_vm3, %v849_v5, %v842_v7 }
 0x458   :  { %1362 = vmatmul.mubr.msk.f32.vlgmr.msra.gmra.mxu1 %vm864_vm4, %v852_v6 }
 0x518   :  { %v1363_v9 = vpop.f32.mrf.mxu1 }
 0x519   :  { %v943_v10 = vadd.f32 %v1363_v9, %v1052_v8 }
 0x51a   :  { %v937_v11 = vpop.f32.mrf.mxu1 }
 0x51b   :  { %947 = vst.msk [vmem:[#allocation2 + $0x8] sm:$0xff] %vm864_vm4, %v943_v10  ;;  %v938_v12 = vadd.f32 %v1052_v8, %v937_v11 }
 0x51d   :  { %946 = vst.msk [vmem:[#allocation2] sm:$0xff] %vm864_vm4, %v938_v12 }
 0x51e   :  { %1412 = shalt.err (!%p1409_p4)
}
 0x51f   :  { %s1427_s21 = smov 128  }
 0x520   :  { %959 = dma.vmem_to_hbm [thread:$0]  %s954_s19, 256, %s1888_s6, [#allocation3], %s1427_s21, %s1427_s21, %s1423_s15  }
 0x521   :  { %1421 = dma.done.wait [#allocation3], 256  }
 0x522   :  { %1422 = vsyncadd [#allocation3], 4294967040 }
 0x523   :  { %963 = vsyncpa [#allocation3], 1 }

</bundles_post_ra>
